<compile_context>
chip_gen: v7x
topology: tpu7x:2x2x1
jax: 0.10.0
libtpu: 0.0.40
codegen_flags: <defaults>
</compile_context>

<pallas_src>
import functools

import jax
import jax.numpy as jnp
from jax.experimental import pallas as pl
from jax.experimental.pallas import tpu as pltpu


def _round_up(x, m):
    return ((x + m - 1) // m) * m


# ---------------------------------------------------------------------------
# Fused MLP kernel (feature-major: activations are (D, tile_n), batch on lanes).
#   refs = (x_ref, w0_ref, b0_ref, w1_ref, b1_ref, ..., o_ref)
#   Weights are in PyTorch layout (Dout, Din); biases as (Dout, 1).
# ---------------------------------------------------------------------------
def _mlp_kernel(*refs, n_layers):
    x_ref = refs[0]
    o_ref = refs[-1]
    wb_refs = refs[1:-1]

    a = x_ref[...]                                     # (Din0, tn), f32
    for i in range(n_layers):                          # statically unrolled
        w = wb_refs[2 * i][...]                        # (Dout, Din)
        b = wb_refs[2 * i + 1][...]                    # (Dout, 1)
        din = w.shape[1]
        if din <= 4:
            # Tiny contraction (e.g. (x, t) input, Din=2): skip the MXU and do
            # VPU broadcast multiply-adds instead of a K=2 systolic matmul.
            z = b                                      # broadcasts to (Dout, tn)
            for k in range(din):
                z = z + w[:, k:k + 1] * a[k:k + 1, :]  # (Dout,1)*(1,tn)->(Dout,tn)
        else:
            # MXU matmul; result accumulates in f32.
            z = jnp.dot(w, a, preferred_element_type=jnp.float32) + b
        if i < n_layers - 1:
            z = jnp.tanh(z)                            # EUP
        a = z
    o_ref[...] = a.astype(o_ref.dtype)                 # (Dout_last, tn), lane-dense


# ---------------------------------------------------------------------------
# NN2 forward: tanh MLP (all layers tanh except the last), single pallas_call.
# ---------------------------------------------------------------------------
def nn2_forward(x, weights, biases, *, block_n=2048):
    """x: (N, Din) row-major.  Returns (N, Dout_last) float32."""
    N, d_in = x.shape
    n_layers = len(weights)
    assert n_layers == len(biases) and n_layers >= 1
    d_out = weights[-1].shape[0]

    # Batch-on-lane layout: (Din, N); pad batch up to a multiple of the tile.
    x_t = x.astype(jnp.float32).T                      # (Din, N) -- tiny host-side copy
    tn = min(block_n, _round_up(N, 128))
    n_pad = _round_up(N, tn)
    if n_pad != N:
        x_t = jnp.pad(x_t, ((0, 0), (0, n_pad - N)))

    in_specs = [pl.BlockSpec((d_in, tn), lambda i: (0, i))]        # batch tile of x
    args = [x_t]
    for w, b in zip(weights, biases):
        w = w.astype(jnp.float32)
        b = jnp.reshape(b.astype(jnp.float32), (w.shape[0], 1))
        in_specs.append(pl.BlockSpec(w.shape, lambda i: (0, 0)))   # VMEM-resident weight
        in_specs.append(pl.BlockSpec(b.shape, lambda i: (0, 0)))   # VMEM-resident bias
        args.append(w)
        args.append(b)

    out = pl.pallas_call(
        functools.partial(_mlp_kernel, n_layers=n_layers),
        out_shape=jax.ShapeDtypeStruct((d_out, n_pad), jnp.float32),
        grid_spec=pl.GridSpec(
            grid=(n_pad // tn,),
            in_specs=in_specs,
            out_specs=pl.BlockSpec((d_out, tn), lambda i: (0, i)),
        ),
        compiler_params=pltpu.CompilerParams(
            dimension_semantics=("parallel",),   # megacore split over batch tiles
        ),
    )(*args)

    return out[:, :N].T                                # back to (N, Dout)


# ---------------------------------------------------------------------------
# Params: xavier_normal_ weights (PyTorch layout (out, in)), zero biases.
# ---------------------------------------------------------------------------
def init_params(key, layers):
    weights, biases = [], []
    for i in range(len(layers) - 1):
        fan_in, fan_out = layers[i], layers[i + 1]
        key, sub = jax.random.split(key)
        std = (2.0 / (fan_in + fan_out)) ** 0.5
        w = std * jax.random.normal(sub, (fan_out, fan_in), dtype=jnp.float32)
        b = jnp.zeros((fan_out, 1), dtype=jnp.float32)
        weights.append(w)
        biases.append(b)
    return weights, biases


def nn2_forward_ref(x, weights, biases):
    """Pure-JAX reference (row-major, same PyTorch-layout params)."""
    a = x.astype(jnp.float32)
    for i in range(len(weights) - 1):
        a = jnp.tanh(a @ weights[i].T + biases[i].T)
    return a @ weights[-1].T + biases[-1].T


if __name__ == "__main__":
    # NN2 maps (x, t) pairs -> scalar u, i.e. layers = [2, hidden..., 1].
    layers = [2, 32, 32, 1]

    key = jax.random.PRNGKey(0)
    key, kp = jax.random.split(key)
    weights, biases = init_params(kp, layers)

    # Case 1: small batch (single tile, padded 64 -> 128).
    key, kx = jax.random.split(key)
    x_small = jax.random.uniform(kx, (64, layers[0]), dtype=jnp.float32,
                                 minval=-1.0, maxval=1.5)
    out_small = jax.block_until_ready(nn2_forward(x_small, weights, biases))
    ref_small = nn2_forward_ref(x_small, weights, biases)
    assert out_small.shape == (64, layers[-1])
    assert jnp.allclose(out_small, ref_small, atol=1e-5, rtol=1e-5)

    # Case 2: multi-tile grid with a batch remainder (300 -> tiles of 256).
    key, kx2 = jax.random.split(key)
    x_big = jax.random.uniform(kx2, (300, layers[0]), dtype=jnp.float32,
                               minval=-1.0, maxval=1.5)
    out_big = jax.block_until_ready(nn2_forward(x_big, weights, biases, block_n=256))
    ref_big = nn2_forward_ref(x_big, weights, biases)
    assert out_big.shape == (300, layers[-1])
    assert jnp.allclose(out_big, ref_big, atol=1e-5, rtol=1e-5)

    print("KERNEL_OK")
</pallas_src>

<mosaic_0001>
module attributes {stable_mosaic.version = 11 : i64} {
  func.func @_mlp_kernel(%arg0: i32, %arg1: memref<2x128xf32, #tpu.memory_space<vmem>>, %arg2: memref<32x2xf32, #tpu.memory_space<vmem>>, %arg3: memref<32x1xf32, #tpu.memory_space<vmem>>, %arg4: memref<32x32xf32, #tpu.memory_space<vmem>>, %arg5: memref<32x1xf32, #tpu.memory_space<vmem>>, %arg6: memref<1x32xf32, #tpu.memory_space<vmem>>, %arg7: memref<1x1xf32, #tpu.memory_space<vmem>>, %arg8: memref<1x128xf32, #tpu.memory_space<vmem>>) attributes {dimension_semantics = [#tpu.dimension_semantics<parallel>], iteration_bounds = array<i64: 1>, scalar_prefetch = 0 : i64, scratch_operands = 0 : i64, tpu.core_type = #tpu.core_type<tc>, window_params = [{transform_indices = @transform_0, window_bounds = array<i64: 2, 128>}, {pipeline_mode = #tpu.pipeline_mode<synchronous>, transform_indices = @transform_1, window_bounds = array<i64: 32, 2>}, {pipeline_mode = #tpu.pipeline_mode<synchronous>, transform_indices = @transform_2, window_bounds = array<i64: 32, 1>}, {pipeline_mode = #tpu.pipeline_mode<synchronous>, transform_indices = @transform_3, window_bounds = array<i64: 32, 32>}, {pipeline_mode = #tpu.pipeline_mode<synchronous>, transform_indices = @transform_4, window_bounds = array<i64: 32, 1>}, {pipeline_mode = #tpu.pipeline_mode<synchronous>, transform_indices = @transform_5, window_bounds = array<i64: 1, 32>}, {pipeline_mode = #tpu.pipeline_mode<synchronous>, transform_indices = @transform_6, window_bounds = array<i64: 1, 1>}, {transform_indices = @transform_7, window_bounds = array<i64: 1, 128>}]} {
    %c0 = arith.constant 0 : index
    %c0_0 = arith.constant 0 : index
    %0 = vector.load %arg1[%c0, %c0_0] : memref<2x128xf32, #tpu.memory_space<vmem>>, vector<2x128xf32>
    %c0_1 = arith.constant 0 : index
    %c0_2 = arith.constant 0 : index
    %1 = vector.load %arg2[%c0_1, %c0_2] : memref<32x2xf32, #tpu.memory_space<vmem>>, vector<32x2xf32>
    %c0_3 = arith.constant 0 : index
    %c0_4 = arith.constant 0 : index
    %2 = vector.load %arg3[%c0_3, %c0_4] : memref<32x1xf32, #tpu.memory_space<vmem>>, vector<32x1xf32>
    %3 = vector.extract_strided_slice %1 {offsets = [0, 0], sizes = [32, 1], strides = [1, 1]} : vector<32x2xf32> to vector<32x1xf32>
    %4 = vector.extract_strided_slice %0 {offsets = [0, 0], sizes = [1, 128], strides = [1, 1]} : vector<2x128xf32> to vector<1x128xf32>
    %5 = vector.broadcast %3 : vector<32x1xf32> to vector<32x128xf32>
    %6 = vector.broadcast %4 : vector<1x128xf32> to vector<32x128xf32>
    %7 = arith.mulf %5, %6 : vector<32x128xf32>
    %8 = vector.broadcast %2 : vector<32x1xf32> to vector<32x128xf32>
    %9 = arith.addf %8, %7 : vector<32x128xf32>
    %10 = vector.extract_strided_slice %1 {offsets = [0, 1], sizes = [32, 1], strides = [1, 1]} : vector<32x2xf32> to vector<32x1xf32>
    %11 = vector.extract_strided_slice %0 {offsets = [1, 0], sizes = [1, 128], strides = [1, 1]} : vector<2x128xf32> to vector<1x128xf32>
    %12 = vector.broadcast %10 : vector<32x1xf32> to vector<32x128xf32>
    %13 = vector.broadcast %11 : vector<1x128xf32> to vector<32x128xf32>
    %14 = arith.mulf %12, %13 : vector<32x128xf32>
    %15 = arith.addf %9, %14 : vector<32x128xf32>
    %16 = math.tanh %15 : vector<32x128xf32>
    %c0_5 = arith.constant 0 : index
    %c0_6 = arith.constant 0 : index
    %17 = vector.load %arg4[%c0_5, %c0_6] : memref<32x32xf32, #tpu.memory_space<vmem>>, vector<32x32xf32>
    %c0_7 = arith.constant 0 : index
    %c0_8 = arith.constant 0 : index
    %18 = vector.load %arg5[%c0_7, %c0_8] : memref<32x1xf32, #tpu.memory_space<vmem>>, vector<32x1xf32>
    %cst = arith.constant dense<0.000000e+00> : vector<32x128xf32>
    %19 = tpu.matmul %17, %16, %cst {dimension_numbers = #tpu.dot_dimension_numbers<[1], [0], [0], [1], [0, 0, 1, 1], [], []>} : vector<32x32xf32>, vector<32x128xf32>, vector<32x128xf32> -> vector<32x128xf32>
    %20 = vector.broadcast %18 : vector<32x1xf32> to vector<32x128xf32>
    %21 = arith.addf %19, %20 : vector<32x128xf32>
    %22 = math.tanh %21 : vector<32x128xf32>
    %c0_9 = arith.constant 0 : index
    %c0_10 = arith.constant 0 : index
    %23 = vector.load %arg6[%c0_9, %c0_10] : memref<1x32xf32, #tpu.memory_space<vmem>>, vector<1x32xf32>
    %c0_11 = arith.constant 0 : index
    %c0_12 = arith.constant 0 : index
    %24 = vector.load %arg7[%c0_11, %c0_12] : memref<1x1xf32, #tpu.memory_space<vmem>>, vector<1x1xf32>
    %cst_13 = arith.constant dense<0.000000e+00> : vector<1x128xf32>
    %25 = tpu.matmul %23, %22, %cst_13 {dimension_numbers = #tpu.dot_dimension_numbers<[1], [0], [0], [1], [0, 0, 1, 1], [], []>} : vector<1x32xf32>, vector<32x128xf32>, vector<1x128xf32> -> vector<1x128xf32>
    %26 = vector.broadcast %24 : vector<1x1xf32> to vector<1x128xf32>
    %27 = arith.addf %25, %26 : vector<1x128xf32>
    %c0_14 = arith.constant 0 : index
    %c0_15 = arith.constant 0 : index
    %28 = vector.load %arg8[%c0_14, %c0_15] : memref<1x128xf32, #tpu.memory_space<vmem>>, vector<1x128xf32>
    tpu.vector_store %arg8[%c0_14, %c0_15], %27 {strides = array<i32>} : memref<1x128xf32, #tpu.memory_space<vmem>>, vector<1x128xf32>,
    return
  }
  func.func @transform_0(%arg0: i32) -> (i32, i32) {
    %c0_i32 = arith.constant 0 : i32
    %c0_i32_0 = arith.constant 0 : i32
    return %c0_i32, %arg0 : i32, i32
  }
  func.func @transform_1(%arg0: i32) -> (i32, i32) {
    %c0_i32 = arith.constant 0 : i32
    %c0_i32_0 = arith.constant 0 : i32
    %c0_i32_1 = arith.constant 0 : i32
    return %c0_i32, %c0_i32_0 : i32, i32
  }
  func.func @transform_2(%arg0: i32) -> (i32, i32) {
    %c0_i32 = arith.constant 0 : i32
    %c0_i32_0 = arith.constant 0 : i32
    %c0_i32_1 = arith.constant 0 : i32
    return %c0_i32, %c0_i32_0 : i32, i32
  }
  func.func @transform_3(%arg0: i32) -> (i32, i32) {
    %c0_i32 = arith.constant 0 : i32
    %c0_i32_0 = arith.constant 0 : i32
    %c0_i32_1 = arith.constant 0 : i32
    return %c0_i32, %c0_i32_0 : i32, i32
  }
  func.func @transform_4(%arg0: i32) -> (i32, i32) {
    %c0_i32 = arith.constant 0 : i32
    %c0_i32_0 = arith.constant 0 : i32
    %c0_i32_1 = arith.constant 0 : i32
    return %c0_i32, %c0_i32_0 : i32, i32
  }
  func.func @transform_5(%arg0: i32) -> (i32, i32) {
    %c0_i32 = arith.constant 0 : i32
    %c0_i32_0 = arith.constant 0 : i32
    %c0_i32_1 = arith.constant 0 : i32
    return %c0_i32, %c0_i32_0 : i32, i32
  }
  func.func @transform_6(%arg0: i32) -> (i32, i32) {
    %c0_i32 = arith.constant 0 : i32
    %c0_i32_0 = arith.constant 0 : i32
    %c0_i32_1 = arith.constant 0 : i32
    return %c0_i32, %c0_i32_0 : i32, i32
  }
  func.func @transform_7(%arg0: i32) -> (i32, i32) {
    %c0_i32 = arith.constant 0 : i32
    %c0_i32_0 = arith.constant 0 : i32
    return %c0_i32, %arg0 : i32, i32
  }
}

</mosaic_0001>

<bundles_post_ra>
// kernel: tpu_custom_call.1
= control target key start
LH: loop header
LB: loop body
LE: loop exit
PB: predicated region body
PF: predicated region fallthrough
CT: control target
= control target key end

     0   :  { %s590_s0 = inlined_call_operand.vmem [shape: f32[2,128], index: 0, kind: input, shape index: {}]   ;;  %s591_s1 = inlined_call_operand.vmem [shape: f32[32,2], index: 1, kind: input, shape index: {}]   ;;  %s592_s2 = inlined_call_operand.vmem [shape: f32[32,1], index: 2, kind: input, shape index: {}]   ;;  %s593_s3 = inlined_call_operand.vmem [shape: f32[32,32], index: 3, kind: input, shape index: {}]   ;;  %s594_s4 = inlined_call_operand.vmem [shape: f32[32,1], index: 4, kind: input, shape index: {}]   ;;  %s595_s5 = inlined_call_operand.vmem [shape: f32[1,32], index: 5, kind: input, shape index: {}]   ;;  %s596_s6 = inlined_call_operand.<no memory space> [shape: f32[1,1], index: 6, kind: input, shape index: {}]   ;;  %s597_s7 = inlined_call_operand.hbm [shape: f32[1,128], index: 7, kind: output, shape index: {}]  }
   0x1   :  { %v12_v0 = vstv %s596_s6 }
   0x2   :  { %13 = vst [vmem:[#allocation2] sm:$0x1] %v12_v0 }
   0x3   :  { %v34_v1 = vld [vmem:[%s592_s2] sm:$0xff]  ;;  %v462_v3 = vmov 0   ;;  %v35_v4 = vld [vmem:[%s592_s2 + $0x8] sm:$0xff] }
   0x4   :  { %v30_v2 = vld [vmem:[%s591_s1] sm:$0xff]  ;;  %415 = vset.pattern.permute.xlu1 %v462_v3  ;;  %414 = vset.pattern.permute.xlu0 %v462_v3  ;;  %v31_v5 = vld [vmem:[%s591_s1 + $0x8] sm:$0xff] }
   0x5   :  { %68 = vperm.xlu1 %415, %v34_v1   ;;  %40 = vperm.xlu0 %414, %v30_v2  }
   0x6   :  { %14 = vsyncpa [#allocation4], 0  ;;  %v33_v6 = vld [vmem:[%s591_s1 + $0x18] sm:$0xff]  ;;  %v463_v7 = vmov 1   ;;  %v32_v8 = vld [vmem:[%s591_s1 + $0x10] sm:$0xff]  ;;  %vm150_vm0 = vcmask 261120   ;;  %v58_v17 = vlaneseq }
   0x7   :  { %v36_v9 = vld [vmem:[%s592_s2 + $0x10] sm:$0xff]  ;;  %v37_v10 = vld [vmem:[%s592_s2 + $0x18] sm:$0xff]  ;;  %v122_v11 = vld [vmem:[%s593_s3] sm:$0xff]  ;;  %v464_v61 = vmov 0.0|0.0   ;;  %vm465_vm1 = vmmov 0   ;;  %v466_v62 = vmov 0.0  }
   0x8   :  { %377 = vmatprep.mubr.msk.f32.mxu0 %vm150_vm0, %v122_v11  ;;  %v126_v12 = vld [vmem:[%s594_s4] sm:$0xff]  ;;  %v127_v13 = vld [vmem:[%s594_s4 + $0x8] sm:$0xff]  ;;  %v128_v14 = vld [vmem:[%s594_s4 + $0x10] sm:$0xff]  ;;  %v551_v18 = vshrl.u32 %v58_v17, 7  ;;  %402 = vmatprep.subr.bf16.mxu1 %v464_v61  ;;  %s467_s6 = smov [#allocation3]  }
   0x9   :  { %73 = vperm.xlu1 %415, %v35_v4   ;;  %45 = vperm.xlu0 %414, %v31_v5   ;;  %v253_v15 = vld [vmem:[#allocation2] sm:$0x1]  ;;  %v129_v16 = vld [vmem:[%s594_s4 + $0x18] sm:$0xff]  ;;  %v123_v58 = vld [vmem:[%s593_s3 + $0x8] sm:$0xff]  ;;  %s343_s10 = sshll.u32 %s467_s6, 4  ;;  %s344_s10 = int_to_ptr.vmem [resolvable:$true] %s343_s10 }
   0xa   :  { %v60_v21 = vsub.s32 0, %v551_v18  ;;  %v29_v22 = vld [vmem:[%s590_s0] sm:$0x3]  ;;  %v108_v23 = vsub.s32 1, %v551_v18  ;;  %v124_v59 = vld [vmem:[%s593_s3 + $0x10] sm:$0xff]  ;;  %v125_v60 = vld [vmem:[%s593_s3 + $0x18] sm:$0xff]  ;;  %391 = vmatprep.mubr.msk.f32.mxu1 %vm465_vm1, %v466_v62  ;;  %p443_p1 = scmp.lt.s32.totalorder %s344_s10, %s344_s10 }
   0xb   :  { %v252_v17 = vld [vmem:[%s595_s5] sm:$0x1]  ;;  %s438_s11 = scalar_lea.vmem %s344_s10, 16  ;;  %s442_s12 = scalar_lea.vmem %s344_s10, 32 }
   0xc   :  { %v61_v26 = vrot.slane %v29_v22, %v60_v21  ;;  %v109_v27 = vrot.slane %v29_v22, %v108_v23  ;;  %p439_p0 = scmp.ne.s32.totalorder %s344_s10, %s438_s11  ;;  %p444_p2 = scmp.lt.s32.totalorder %s442_s12, %s438_s11 }
   0xd   :  { %416 = vset.pattern.permute.xlu1 %v463_v7  ;;  %55 = vperm.xlu0 %414, %v33_v6  }
   0xe   :  { %95 = vperm.xlu1 %416, %v31_v5   ;;  %p445_p3 = por %p444_p2, %p443_p1 }
  0x10   :  { %p446_p4 = pnand %p445_p3, %p439_p0 }
  0x11   :  { %418 = vset.pattern.permute.xlu0 %v463_v7 }
  0x12   :  { %417 = vset.pattern.permute.xlu1 %v462_v3  ;;  %91 = vperm.xlu0 %418, %v30_v2  }
  0x13   :  { %50 = vperm.xlu1 %417, %v32_v8  }
  0x16   :  { %99 = vperm.xlu0 %418, %v32_v8  }
  0x17   :  { %78 = vperm.xlu1 %417, %v36_v9  }
  0x1a   :  { %421 = vset.pattern.permute.xlu0 %v462_v3 }
  0x1b   :  { %83 = vperm.xlu1 %417, %v37_v10   ;;  %137 = vperm.xlu0 %421, %v127_v13  }
  0x1f   :  { %419 = vset.pattern.permute.xlu1 %v463_v7  ;;  %256 = vperm.xlu0 %421, %v253_v15  }
  0x20   :  { %103 = vperm.xlu1 %419, %v33_v6  }
  0x24   :  { %420 = vset.pattern.permute.xlu1 %v462_v3 }
  0x25   :  { %132 = vperm.xlu1 %420, %v126_v12  }
  0x29   :  { %142 = vperm.xlu1 %420, %v128_v14  }
  0x2d   :  { %147 = vperm.xlu1 %420, %v129_v16  }
  0x84   :  { %v69_v19 = vpop.permute.xlu1 %68  ;;  %v41_v20 = vpop.permute.xlu0 %40 }
  0x85   :  { %v62_v31 = vmul.f32 %v61_v26, %v41_v20 }
  0x87   :  { %v86_v36 = vadd.f32 %v69_v19, %v62_v31 }
  0x88   :  { %v74_v24 = vpop.permute.xlu1 %73  ;;  %v46_v25 = vpop.permute.xlu0 %45 }
  0x89   :  { %v63_v28 = vmul.f32 %v61_v26, %v46_v25 }
  0x8b   :  { %v87_v33 = vadd.f32 %v74_v24, %v63_v28 }
  0x8c   :  { %v56_v29 = vpop.permute.xlu0 %55 }
  0x8d   :  { %v96_v30 = vpop.permute.xlu1 %95  ;;  %v65_v46 = vmul.f32 %v61_v26, %v56_v29 }
  0x8e   :  { %v111_v32 = vmul.f32 %v109_v27, %v96_v30 }
  0x90   :  { %v115_v34 = vadd.f32 %v111_v32, %v87_v33 }
  0x91   :  { %v92_v35 = vpop.permute.xlu0 %91 }
  0x92   :  { %v110_v37 = vmul.f32 %v109_v27, %v92_v35  ;;  %v51_v38 = vpop.permute.xlu1 %50  ;;  %422 = vtanh.f32 %v115_v34 }
  0x93   :  { %v64_v42 = vmul.f32 %v61_v26, %v51_v38 }
  0x94   :  { %v114_v39 = vadd.f32 %v110_v37, %v86_v36 }
  0x95   :  { %v100_v41 = vpop.permute.xlu0 %99 }
  0x96   :  { %424 = vtanh.f32 %v114_v39  ;;  %v79_v40 = vpop.permute.xlu1 %78  ;;  %v112_v45 = vmul.f32 %v109_v27, %v100_v41 }
  0x97   :  { %v88_v44 = vadd.f32 %v79_v40, %v64_v42 }
  0x99   :  { %v116_v48 = vadd.f32 %v112_v45, %v88_v44 }
  0x9a   :  { %v84_v43 = vpop.permute.xlu1 %83  ;;  %v138_v1 = vpop.permute.xlu0 %137 }
  0x9b   :  { %v89_v51 = vadd.f32 %v84_v43, %v65_v46  ;;  %426 = vtanh.f32 %v116_v48 }
  0x9c   :  { %v423_v47 = vpop.eup %422 }
  0x9e   :  { %v257_v19 = vpop.permute.xlu0 %256 }
  0x9f   :  { %v104_v49 = vpop.permute.xlu1 %103  ;;  %v262_v20 = vrot.slane %v257_v19, %v60_v21 }
  0xa0   :  { %v425_v50 = vpop.eup %424  ;;  %v113_v52 = vmul.f32 %v109_v27, %v104_v49 }
  0xa1   :  { %v394_v53 = vpack.c.bf16 %v423_v47, %v425_v50 }
  0xa2   :  { %v117_v54 = vadd.f32 %v113_v52, %v89_v51 }
  0xa3   :  { %395 = vmatprep.subr.bf16.mxu0 %v394_v53 }
  0xa4   :  { %428 = vtanh.f32 %v117_v54  ;;  %397 = vmatpush3.bf16.msra.mxu0 %v394_v53  ;;  %v133_v63 = vpop.permute.xlu1 %132 }
  0xa5   :  { %v427_v55 = vpop.eup %426 }
  0xa8   :  { %v143_v0 = vpop.permute.xlu1 %142 }
  0xac   :  { %v148_v6 = vpop.permute.xlu1 %147 }
  0xae   :  { %v429_v56 = vpop.eup %428 }
  0xaf   :  { %v398_v57 = vpack.c.bf16 %v429_v56, %v427_v55 }
  0xb1   :  { %399 = vmatprep.subr.bf16.mxu0 %v398_v57 }
  0xb2   :  { %401 = vmatpush3.bf16.msra.mxu0 %v398_v57 }
  0xb5   :  { %378 = vmatmul.mubr.msk.f32.vlgmr.msra.gmra.mrb[0].mxu0 %vm150_vm0, %v123_v58 }
  0xb6   :  { %380 = vmatprep.mubr.msk.f32.mxu0 %vm150_vm0, %v124_v59 }
  0xb9   :  { %381 = vmatmul.mubr.msk.f32.gmra.mrb[2].mxu0 %vm150_vm0, %v125_v60 }
 0x188   :  { %v379_v2 = vpop.f32.mrb[0].mxu0 }
 0x189   :  { %v235_v3 = vadd.f32 %v379_v2, %v138_v1  ;;  %v229_v4 = vpop.f32.mrb[1].mxu0 }
 0x18a   :  { %v230_v5 = vadd.f32 %v229_v4, %v133_v63 }
 0x18b   :  { %430 = vtanh.f32 %v235_v3 }
 0x18c   :  { %432 = vtanh.f32 %v230_v5  ;;  %v382_v7 = vpop.f32.mrb[2].mxu0 }
 0x18d   :  { %v245_v8 = vadd.f32 %v382_v7, %v148_v6  ;;  %v239_v9 = vpop.f32.mrb[3].mxu0 }
 0x18e   :  { %v240_v10 = vadd.f32 %v239_v9, %v143_v0 }
 0x18f   :  { %434 = vtanh.f32 %v245_v8 }
 0x190   :  { %436 = vtanh.f32 %v240_v10 }
 0x195   :  { %v431_v11 = vpop.eup %430 }
 0x196   :  { %v433_v12 = vpop.eup %432 }
 0x197   :  { %v403_v13 = vpack.c.bf16 %v431_v11, %v433_v12 }
 0x199   :  { %v435_v14 = vpop.eup %434  ;;  %404 = vmatpush3.bf16.msra.mxu1 %v403_v13 }
 0x19a   :  { %v437_v15 = vpop.eup %436  ;;  %405 = vmatprep.subr.bf16.mxu1 %v464_v61 }
 0x19b   :  { %v406_v16 = vpack.c.bf16 %v435_v14, %v437_v15 }
 0x19d   :  { %407 = vmatpush3.bf16.msra.mxu1 %v406_v16 }
 0x1a0   :  { %392 = vmatmul.mubr.msk.f32.vlgmr.msra.gmra.mrb[0].mxu1 %vm150_vm0, %v252_v17 }
 0x273   :  { %v332_v22 = vpop.f32.mrb[0].mxu1 }
 0x274   :  { %v333_v23 = vadd.f32 %v332_v22, %v262_v20  ;;  %v393_v24 = vpop.f32.mrb[1].mxu1 }
 0x276   :  { %336 = vst [vmem:[#allocation3] sm:$0x1] %v333_v23 }
 0x277   :  { %449 = shalt.err (!%p446_p4)
}
 0x278   :  { %s450_s14 = scalar_lea.hbm %s597_s7, 16 }
 0x279   :  { %p451_p5 = scmp.ne.s32.totalorder %s597_s7, %s450_s14  ;;  %p454_p6 = scmp.lt.u32.totalorder %s450_s14, %s597_s7 }
 0x27b   :  { %p456_p7 = pnand %p454_p6, %p451_p5 }
 0x27d   :  { %459 = shalt.err (!%p456_p7)
}
 0x27e   :  { %346 = dma.vmem_to_hbm [thread:$0]  %s344_s10, 16, %s597_s7, [#allocation4]  }
 0x27f   :  { %460 = dma.done.wait [#allocation4], 16  }
 0x280   :  { %461 = vsyncadd [#allocation4], 4294967280 }
 0x281   :  { %350 = vsyncpa [#allocation4], 1 }

</bundles_post_ra>
